<compile_context>
chip_gen: v7x
topology: tpu7x:2x2x1
jax: 0.10.0
libtpu: 0.0.40
codegen_flags: <defaults>
</compile_context>

<pallas_src>
import functools

import jax
import jax.numpy as jnp
from jax.experimental import pallas as pl
from jax.experimental.pallas import tpu as pltpu


def _backconv_kernel(col_ref, row_ref, x_ref, o_ref, *,
                     kernel_size, H, W, threshold, tolerance):
    """One block = TB flattened (n, c) planes of shape (TB, H*W)."""
    k = kernel_size
    p = k // 2
    L = H * W
    thr = jnp.float32(threshold / 255.0)
    count_thr = jnp.float32(k * k * tolerance)

    x = x_ref[0]                                   # (TB, L) float32
    # Hoisted broadcasts of the per-position column / row coordinate maps.
    col = jnp.broadcast_to(col_ref[...], x.shape)  # (TB, L) int32, value = w of position
    row = jnp.broadcast_to(row_ref[...], x.shape)  # (TB, L) int32, value = h of position

    cond = (x >= thr).astype(jnp.float32)

    def shifted(v, s):
        # shifted(v, s)[..., l] == v[..., l + s]  (cyclic per plane; only consumed where
        # the source stays inside the same row/plane, guaranteed by the masks below).
        s = s % L
        if s == 0:
            return v
        return pltpu.roll(v, L - s, 1)

    # ---- pass 1: reflect box-sum along W (shifts of +-j inside each row) ----------
    rw = {j: shifted(cond, j) for j in range(-p, p + 1)}
    r = rw[0]                                             # init from first term
    for j in range(1, p + 1):
        r = r + jnp.where(col >= j, rw[-j], 0.0)          # cond(h, w-j), valid w >= j
        r = r + jnp.where(col <= W - 1 - j, rw[j], 0.0)   # cond(h, w+j), valid w <= W-1-j
    # reflect corrections for the p leftmost / rightmost columns
    for e in range(p):
        w_left, w_right = e, W - 1 - e
        for m in range(1, p - e + 1):
            r = r + jnp.where(col == w_left, rw[m - e], 0.0)   # += cond(h, m)
            r = r + jnp.where(col == w_right, rw[e - m], 0.0)  # += cond(h, W-1-m)

    # ---- pass 2: reflect box-sum along H (shifts of +-i*W in the flat axis) -------
    rh = {i: shifted(r, i * W) for i in range(-p, p + 1)}
    acc = rh[0]
    for i in range(1, p + 1):
        acc = acc + jnp.where(row >= i, rh[-i], 0.0)
        acc = acc + jnp.where(row <= H - 1 - i, rh[i], 0.0)
    for e in range(p):
        h_top, h_bot = e, H - 1 - e
        for m in range(1, p - e + 1):
            acc = acc + jnp.where(row == h_top, rh[m - e], 0.0)   # += R(m, w)
            acc = acc + jnp.where(row == h_bot, rh[e - m], 0.0)   # += R(H-1-m, w)

    black = (acc >= count_thr).astype(jnp.float32)
    o_ref[0] = x * (1.0 - black)


def _choose_planes_per_block(nc, l, bytes_per_elem=4, target_bytes=2 << 20):
    """Largest divisor of nc with block <= target; prefer >=2 grid steps (v7x 2 TCs)."""
    divs = [d for d in range(1, nc + 1)
            if nc % d == 0 and d * l * bytes_per_elem <= target_bytes]
    if not divs:
        return 1
    multi = [d for d in divs if nc // d >= 2]
    pool = multi if multi else divs
    aligned = [d for d in pool if d % 8 == 0]   # sublane-aligned blocks when possible
    return max(aligned) if aligned else max(pool)


def back_conv2d(x, *, kernel_size, threshold, tolerance, target_block_bytes=2 << 20):
    """Pallas implementation of BackConv2d.forward. x is NCHW float32."""
    assert kernel_size % 2 == 1, "odd kernel_size required to match Conv2d(padding=k//2)"
    N, C, H, W = x.shape
    p = kernel_size // 2
    assert p < H and p < W, "reflect padding requires pad < spatial dims"

    x = x.astype(jnp.float32)
    NC, L = N * C, H * W

    tb = _choose_planes_per_block(NC, L, 4, target_block_bytes)
    G = NC // tb
    x_flat = x.reshape(G, tb, L)                 # free reshape: NCHW is contiguous

    # Per-position (h, w) coordinate maps for the flattened spatial axis (tiny,
    # grid-invariant inputs; avoids in-kernel vector integer div/mod).
    pos = jnp.arange(L, dtype=jnp.int32)
    col_idx = (pos % W).reshape(1, L)
    row_idx = (pos // W).reshape(1, L)

    kernel = functools.partial(
        _backconv_kernel,
        kernel_size=kernel_size, H=H, W=W,
        threshold=threshold, tolerance=tolerance,
    )

    out = pl.pallas_call(
        kernel,
        out_shape=jax.ShapeDtypeStruct((G, tb, L), jnp.float32),
        grid_spec=pltpu.PrefetchScalarGridSpec(
            num_scalar_prefetch=0,
            grid=(G,),
            in_specs=[
                pl.BlockSpec((1, L), lambda i: (0, 0)),        # col_idx (grid-invariant)
                pl.BlockSpec((1, L), lambda i: (0, 0)),        # row_idx (grid-invariant)
                pl.BlockSpec((1, tb, L), lambda i: (i, 0, 0)), # x planes
            ],
            out_specs=pl.BlockSpec((1, tb, L), lambda i: (i, 0, 0)),
        ),
        compiler_params=pltpu.CompilerParams(
            dimension_semantics=("parallel",),
            vmem_limit_bytes=48 * 1024 * 1024,   # headroom under v7x's 64 MiB
        ),
    )(col_idx, row_idx, x_flat)

    return out.reshape(N, C, H, W)


def _reference(x, *, kernel_size, threshold, tolerance):
    """Pure-JAX reference mirroring the PyTorch forward."""
    p = kernel_size // 2
    cond = (x >= threshold / 255.0).astype(jnp.float32)
    cond_pad = jnp.pad(cond, ((0, 0), (0, 0), (p, p), (p, p)), mode="reflect")
    N, C, H, W = x.shape
    acc = jnp.zeros((N, C, H, W), jnp.float32)
    for di in range(kernel_size):
        for dj in range(kernel_size):
            acc = acc + cond_pad[:, :, di:di + H, dj:dj + W]
    mask = (acc >= kernel_size * kernel_size * tolerance).astype(jnp.float32)
    return x * (1.0 - mask)


if __name__ == "__main__":
    # Module hyperparameters (deterministic, in-script). The all-ones kernel buffer
    # from __init__ is implicit in the box-sum formulation.
    kernel_size = 3
    channels = 4
    threshold = 30.0
    tolerance = 0.6

    key = jax.random.PRNGKey(0)
    x = jax.random.uniform(key, (2, channels, 16, 16), dtype=jnp.float32)

    out = back_conv2d(x, kernel_size=kernel_size, threshold=threshold, tolerance=tolerance)
    out = jax.block_until_ready(out)
    ref = _reference(x, kernel_size=kernel_size, threshold=threshold, tolerance=tolerance)
    assert out.shape == x.shape and out.dtype == jnp.float32
    assert jnp.allclose(out, ref, atol=1e-6), "Pallas output mismatch vs reference (k=3)"

    # generality check: larger odd kernel exercises the multi-term reflect corrections
    out5 = jax.block_until_ready(
        back_conv2d(x, kernel_size=5, threshold=threshold, tolerance=tolerance))
    ref5 = _reference(x, kernel_size=5, threshold=threshold, tolerance=tolerance)
    assert jnp.allclose(out5, ref5, atol=1e-6), "Pallas output mismatch vs reference (k=5)"

    print("KERNEL_OK")
</pallas_src>

<mosaic_0001>
module attributes {stable_mosaic.version = 11 : i64} {
  func.func @_backconv_kernel(%arg0: i32, %arg1: memref<1x256xi32, #tpu.memory_space<vmem>>, %arg2: memref<1x256xi32, #tpu.memory_space<vmem>>, %arg3: memref<1x4x256xf32, #tpu.memory_space<vmem>>, %arg4: memref<1x4x256xf32, #tpu.memory_space<vmem>>) attributes {dimension_semantics = [#tpu.dimension_semantics<parallel>], iteration_bounds = array<i64: 2>, scalar_prefetch = 0 : i64, scratch_operands = 0 : i64, tpu.core_type = #tpu.core_type<tc>, window_params = [{pipeline_mode = #tpu.pipeline_mode<synchronous>, transform_indices = @transform_0, window_bounds = array<i64: 1, 256>}, {pipeline_mode = #tpu.pipeline_mode<synchronous>, transform_indices = @transform_1, window_bounds = array<i64: 1, 256>}, {transform_indices = @transform_2, window_bounds = array<i64: 1, 4, 256>}, {transform_indices = @transform_3, window_bounds = array<i64: 1, 4, 256>}]} {
    %c0 = arith.constant 0 : index
    %c0_0 = arith.constant 0 : index
    %c0_1 = arith.constant 0 : index
    %0 = vector.load %arg3[%c0, %c0_0, %c0_1] : memref<1x4x256xf32, #tpu.memory_space<vmem>>, vector<1x4x256xf32>
    %1 = vector.shape_cast %0 : vector<1x4x256xf32> to vector<4x256xf32>
    %c0_2 = arith.constant 0 : index
    %c0_3 = arith.constant 0 : index
    %2 = vector.load %arg1[%c0_2, %c0_3] : memref<1x256xi32, #tpu.memory_space<vmem>>, vector<1x256xi32>
    %3 = vector.shape_cast %2 : vector<1x256xi32> to vector<1x256xi32>
    %4 = vector.broadcast %3 : vector<1x256xi32> to vector<4x256xi32>
    %c0_4 = arith.constant 0 : index
    %c0_5 = arith.constant 0 : index
    %5 = vector.load %arg2[%c0_4, %c0_5] : memref<1x256xi32, #tpu.memory_space<vmem>>, vector<1x256xi32>
    %6 = vector.shape_cast %5 : vector<1x256xi32> to vector<1x256xi32>
    %7 = vector.broadcast %6 : vector<1x256xi32> to vector<4x256xi32>
    %cst = arith.constant 0.117647059 : f32
    %8 = vector.broadcast %cst : f32 to vector<4x256xf32>
    %9 = arith.cmpf oge, %1, %8 : vector<4x256xf32>
    %10 = arith.extui %9 : vector<4x256xi1> to vector<4x256xi32>
    %11 = arith.sitofp %10 : vector<4x256xi32> to vector<4x256xf32>
    %c1_i32 = arith.constant 1 : i32
    %12 = tpu.dynamic_rotate %11 by %c1_i32 dim 1 : vector<4x256xf32>, i32 -> vector<4x256xf32>
    %c255_i32 = arith.constant 255 : i32
    %13 = tpu.dynamic_rotate %11 by %c255_i32 dim 1 : vector<4x256xf32>, i32 -> vector<4x256xf32>
    %c1_i32_6 = arith.constant 1 : i32
    %14 = vector.broadcast %c1_i32_6 : i32 to vector<4x256xi32>
    %15 = arith.cmpi sge, %4, %14 : vector<4x256xi32>
    %cst_7 = arith.constant 0.000000e+00 : f32
    %16 = vector.broadcast %cst_7 : f32 to vector<4x256xf32>
    %17 = arith.select %15, %12, %16 : vector<4x256xi1>, vector<4x256xf32>
    %18 = arith.addf %11, %17 : vector<4x256xf32>
    %c14_i32 = arith.constant 14 : i32
    %19 = vector.broadcast %c14_i32 : i32 to vector<4x256xi32>
    %20 = arith.cmpi sle, %4, %19 : vector<4x256xi32>
    %cst_8 = arith.constant 0.000000e+00 : f32
    %21 = vector.broadcast %cst_8 : f32 to vector<4x256xf32>
    %22 = arith.select %20, %13, %21 : vector<4x256xi1>, vector<4x256xf32>
    %23 = arith.addf %18, %22 : vector<4x256xf32>
    %c0_i32 = arith.constant 0 : i32
    %24 = vector.broadcast %c0_i32 : i32 to vector<4x256xi32>
    %25 = arith.cmpi eq, %4, %24 : vector<4x256xi32>
    %cst_9 = arith.constant 0.000000e+00 : f32
    %26 = vector.broadcast %cst_9 : f32 to vector<4x256xf32>
    %27 = arith.select %25, %13, %26 : vector<4x256xi1>, vector<4x256xf32>
    %28 = arith.addf %23, %27 : vector<4x256xf32>
    %c15_i32 = arith.constant 15 : i32
    %29 = vector.broadcast %c15_i32 : i32 to vector<4x256xi32>
    %30 = arith.cmpi eq, %4, %29 : vector<4x256xi32>
    %cst_10 = arith.constant 0.000000e+00 : f32
    %31 = vector.broadcast %cst_10 : f32 to vector<4x256xf32>
    %32 = arith.select %30, %12, %31 : vector<4x256xi1>, vector<4x256xf32>
    %33 = arith.addf %28, %32 : vector<4x256xf32>
    %c16_i32 = arith.constant 16 : i32
    %34 = tpu.dynamic_rotate %33 by %c16_i32 dim 1 : vector<4x256xf32>, i32 -> vector<4x256xf32>
    %c240_i32 = arith.constant 240 : i32
    %35 = tpu.dynamic_rotate %33 by %c240_i32 dim 1 : vector<4x256xf32>, i32 -> vector<4x256xf32>
    %c1_i32_11 = arith.constant 1 : i32
    %36 = vector.broadcast %c1_i32_11 : i32 to vector<4x256xi32>
    %37 = arith.cmpi sge, %7, %36 : vector<4x256xi32>
    %cst_12 = arith.constant 0.000000e+00 : f32
    %38 = vector.broadcast %cst_12 : f32 to vector<4x256xf32>
    %39 = arith.select %37, %34, %38 : vector<4x256xi1>, vector<4x256xf32>
    %40 = arith.addf %33, %39 : vector<4x256xf32>
    %c14_i32_13 = arith.constant 14 : i32
    %41 = vector.broadcast %c14_i32_13 : i32 to vector<4x256xi32>
    %42 = arith.cmpi sle, %7, %41 : vector<4x256xi32>
    %cst_14 = arith.constant 0.000000e+00 : f32
    %43 = vector.broadcast %cst_14 : f32 to vector<4x256xf32>
    %44 = arith.select %42, %35, %43 : vector<4x256xi1>, vector<4x256xf32>
    %45 = arith.addf %40, %44 : vector<4x256xf32>
    %c0_i32_15 = arith.constant 0 : i32
    %46 = vector.broadcast %c0_i32_15 : i32 to vector<4x256xi32>
    %47 = arith.cmpi eq, %7, %46 : vector<4x256xi32>
    %cst_16 = arith.constant 0.000000e+00 : f32
    %48 = vector.broadcast %cst_16 : f32 to vector<4x256xf32>
    %49 = arith.select %47, %35, %48 : vector<4x256xi1>, vector<4x256xf32>
    %50 = arith.addf %45, %49 : vector<4x256xf32>
    %c15_i32_17 = arith.constant 15 : i32
    %51 = vector.broadcast %c15_i32_17 : i32 to vector<4x256xi32>
    %52 = arith.cmpi eq, %7, %51 : vector<4x256xi32>
    %cst_18 = arith.constant 0.000000e+00 : f32
    %53 = vector.broadcast %cst_18 : f32 to vector<4x256xf32>
    %54 = arith.select %52, %34, %53 : vector<4x256xi1>, vector<4x256xf32>
    %55 = arith.addf %50, %54 : vector<4x256xf32>
    %cst_19 = arith.constant 5.400000e+00 : f32
    %56 = vector.broadcast %cst_19 : f32 to vector<4x256xf32>
    %57 = arith.cmpf oge, %55, %56 : vector<4x256xf32>
    %58 = arith.extui %57 : vector<4x256xi1> to vector<4x256xi32>
    %59 = arith.sitofp %58 : vector<4x256xi32> to vector<4x256xf32>
    %cst_20 = arith.constant 1.000000e+00 : f32
    %60 = vector.broadcast %cst_20 : f32 to vector<4x256xf32>
    %61 = arith.subf %60, %59 : vector<4x256xf32>
    %62 = arith.mulf %1, %61 : vector<4x256xf32>
    %c0_21 = arith.constant 0 : index
    %c0_22 = arith.constant 0 : index
    %c0_23 = arith.constant 0 : index
    %63 = vector.load %arg4[%c0_21, %c0_22, %c0_23] : memref<1x4x256xf32, #tpu.memory_space<vmem>>, vector<1x4x256xf32>
    %64 = vector.shape_cast %63 : vector<1x4x256xf32> to vector<4x256xf32>
    %65 = vector.shape_cast %62 : vector<4x256xf32> to vector<1x4x256xf32>
    tpu.vector_store %arg4[%c0_21, %c0_22, %c0_23], %65 {strides = array<i32>} : memref<1x4x256xf32, #tpu.memory_space<vmem>>, vector<1x4x256xf32>,
    return
  }
  func.func @transform_0(%arg0: i32) -> (i32, i32) {
    %c0_i32 = arith.constant 0 : i32
    %c0_i32_0 = arith.constant 0 : i32
    %c0_i32_1 = arith.constant 0 : i32
    return %c0_i32, %c0_i32_0 : i32, i32
  }
  func.func @transform_1(%arg0: i32) -> (i32, i32) {
    %c0_i32 = arith.constant 0 : i32
    %c0_i32_0 = arith.constant 0 : i32
    %c0_i32_1 = arith.constant 0 : i32
    return %c0_i32, %c0_i32_0 : i32, i32
  }
  func.func @transform_2(%arg0: i32) -> (i32, i32, i32) {
    %c0_i32 = arith.constant 0 : i32
    %c0_i32_0 = arith.constant 0 : i32
    %c0_i32_1 = arith.constant 0 : i32
    return %arg0, %c0_i32, %c0_i32_0 : i32, i32, i32
  }
  func.func @transform_3(%arg0: i32) -> (i32, i32, i32) {
    %c0_i32 = arith.constant 0 : i32
    %c0_i32_0 = arith.constant 0 : i32
    %c0_i32_1 = arith.constant 0 : i32
    return %arg0, %c0_i32, %c0_i32_0 : i32, i32, i32
  }
}

</mosaic_0001>

<bundles_post_ra>
// kernel: tpu_custom_call.1
= control target key start
LH: loop header
LB: loop body
LE: loop exit
PB: predicated region body
PF: predicated region fallthrough
CT: control target
= control target key end

     0   :  { %8 = vsyncpa [#allocation3], 0  ;;  %s903_s0 = inlined_call_operand.hbm [shape: s32[1,256], index: 0, kind: input, shape index: {}]   ;;  %s904_s1 = inlined_call_operand.vmem [shape: s32[1,256], index: 1, kind: input, shape index: {}]   ;;  %s905_s2 = inlined_call_operand.hbm [shape: f32[2,4,256], index: 2, kind: input, shape index: {}]   ;;  %s906_s3 = inlined_call_operand.hbm [shape: f32[2,4,256], index: 3, kind: output, shape index: {}]  }
   0x1   :  { %9 = vsyncpa [#allocation6], 0 }
   0x2   :  { %11 = vsyncpa [#allocation6 + $0x1], 0 }
   0x3   :  { %12 = vsyncpa [#allocation4], 0 }
   0x4   :  { %14 = vsyncpa [#allocation4 + $0x1], 0  ;;  %s683_s12 = smov 0   ;;  %s685_s13 = smov 0  }
   0x5   :  { %s687_s14 = smov 0   ;;  %s689_s15 = smov 0  }
   0x6 LB: > { %s704_s16 = sadd.s32 4294967295, %s653_s15   ;;  %s433_s17 = sadd.s32 4294967294, %s653_s15   ;;  %s653_s15 = sphi %s689_s15, %s930_s15   ;;  %s649_s14 = sphi %s687_s14, %s929_s14   ;;  %s645_s13 = sphi %s685_s13, %s928_s13   ;;  %s641_s12 = sphi %s683_s12, %s927_s12  }
   0x7   : > { %p82_p0 = scmp.ne.s32.totalorder %s645_s13, %s641_s12  ;;  %p907_p1 = scmp.eq.s32.totalorder %s704_s16, 0 }
   0x8   : > { %p112_p3 = scmp.eq.s32.totalorder %s433_s17, 1  ;;  %p434_p5 = scmp.ge.s32.totalorder %s653_s15, 1 }
   0x9   : > { %p713_p4 = por %p907_p1, %p82_p0  ;;  %p119_p7 = scmp.lt.s32.totalorder %s653_s15, 3 }
   0xa   : > { %p718_p6 = por %p112_p3, %p82_p0  ;;  %s655_s21 = smov [#allocation2]  }
   0xb   : > { %s910_s18 = scalar_select %p713_p4, 1, 0 }
   0xc   : > { %s911_s19 = scalar_select %p718_p6, 1, 0 }
   0xd   : > { %p723_p8 = pnand %p434_p5, %p119_p7  ;;  %s132_s22 = sshll.u32 %s655_s21, 4  ;;  %s133_s22 = int_to_ptr.vmem [resolvable:$true] %s132_s22 }
   0xe   : > { %s731_s23 = sadd.s32 1, %s653_s15   ;;  %s69_s27 = sadd.s32 1, %s649_s14 }
   0xf   : > { %s912_s20 = scalar_select %p723_p8, 1, 0 }
  0x10   : > { %p461_p10 = pneg %p723_p8  ;;  %s66_s25 = ssub.s32 %s653_s15, %s731_s23 }
  0x11   : > { %p741_p12 = scmp.eq.s32.totalorder %s66_s25, 0  ;;  %s525_s30 = scalar_lea.hbm %s903_s0, 32 }
  0x12   : > { %p735_p11 = pnand %p461_p10, %p907_p1  ;;  %p526_p0 = scmp.ne.s32.totalorder %s903_s0, %s525_s30 }
  0x13   : > { %s914_s26 = scalar_select %p741_p12, 1, 0 }
  0x14   : > { %p527_p3 = pneg %p735_p11  ;;  %p532_p10 = scmp.lt.u32.totalorder %s525_s30, %s903_s0 }
  0x16   : > { %p528_p5 = pnand %p527_p3, %p526_p0 }
  0x18   : > { %p529_p7 = pneg %p528_p5 }
  0x1a   : > { %p534_p9 = pnand %p532_p10, %p529_p7 }
  0x1c   : > { %537 = shalt.err (!%p534_p9)
}
  0x1d   : > { %s538_s8 = scalar_lea.vmem %s133_s22, 32  ;;  %p546_p6 = scmp.lt.s32.totalorder %s133_s22, %s133_s22 }
  0x1e   : > { %p539_p1 = scmp.ne.s32.totalorder %s133_s22, %s538_s8  ;;  %p547_p4 = scmp.lt.s32.totalorder %s538_s8, %s538_s8 }
  0x20   : > { %p541_p2 = pnand %p539_p1, %p527_p3  ;;  %p548_p8 = por %p547_p4, %p546_p6 }
  0x22   : > { %p542_p13 = pneg %p541_p2 }
  0x24   : > { %p549_p12 = pnand %p548_p8, %p542_p13 }
  0x26   : > { %552 = shalt.err (!%p549_p12)
}
  0x27   : > { %464 = dma.hbm_to_vmem [thread:$0]  (!%p735_p11), %s903_s0, 32, %s133_s22, [#allocation3]  }
  0x28   : > { %p915_p1 = scmp.ne.s32.totalorder %s914_s26, 0  ;;  %p77_p2 = scmp.eq.s32.totalorder %s653_s15, 0 }
  0x29   : > { %p916_p4 = scmp.ne.s32.totalorder %s649_s14, %s645_s13  ;;  %p917_p6 = scmp.eq.s32.totalorder %s704_s16, 1 }
  0x2a   : > { %s767_s11 = scalar_select %p915_p1, %s649_s14, %s69_s27  }
  0x2b   : > { %p775_p8 = por %p917_p6, %p916_p4  ;;  %p474_p9 = scmp.lt.s32.totalorder %s653_s15, 2 }
  0x2c   : > { %s146_s21 = sand.u32 1, %s649_s14   ;;  %p919_p12 = pmov %p916_p4 }
  0x2d   : > { %s437_s24 = sshll.u32 %s146_s21, 3  ;;  %s451_s25 = sshll.u32 %s653_s15, 7 }
  0x2e   : > { %p78_p13 = por %p77_p2, %p919_p12  ;;  %s788_s22 = scalar_lea.hbm %s905_s2, %s451_s25 }
  0x2f   : > { %s150_s26 = scalar_lea.vmem [#allocation5], %s437_s24  ;;  %s147_s4 = scalar_lea.sflag [#allocation6], %s146_s21 }
  0x30   : > { %s158_s27 = sshll.u32 %s150_s26, 4  ;;  %p790_p11 = pnand %p474_p9, %p78_p13  ;;  %s794_s27 = int_to_ptr.vmem [resolvable:$true] %s158_s27 }
  0x31   : > { %s553_s5 = scalar_lea.hbm %s788_s22, 128  ;;  %s558_s8 = scalar_lea.hbm %s905_s2, 256 }
  0x32   : > { %p554_p0 = scmp.ne.s32.totalorder %s788_s22, %s553_s5  ;;  %p555_p3 = pneg %p790_p11 }
  0x33   : > { %p559_p10 = scmp.lt.u32.totalorder %s788_s22, %s905_s2  ;;  %p560_p1 = scmp.lt.u32.totalorder %s558_s8, %s553_s5 }
  0x34   : > { %p556_p5 = pnand %p555_p3, %p554_p0  ;;  %p562_p4 = scmp.lt.u32.totalorder %s553_s5, %s788_s22 }
  0x35   : > { %p561_p2 = por %p560_p1, %p559_p10 }
  0x36   : > { %p557_p7 = pneg %p556_p5 }
  0x37   : > { %p563_p6 = por %p562_p4, %p561_p2 }
  0x39   : > { %p564_p9 = pnand %p563_p6, %p557_p7 }
  0x3b   : > { %567 = shalt.err (!%p564_p9)
}
  0x3c   : > { %s568_s21 = scalar_lea.vmem %s794_s27, 128  ;;  %s656_s24 = smov [#allocation5]  }
  0x3d   : > { %p569_p12 = scmp.ne.s32.totalorder %s794_s27, %s568_s21  ;;  %s573_s25 = sshll.u32 %s656_s24, 4  ;;  %s574_s25 = int_to_ptr.vmem [resolvable:$false] %s573_s25 }
  0x3e   : > { %s575_s28 = scalar_lea.vmem %s574_s25, 256  ;;  %p576_p5 = scmp.lt.s32.totalorder %s794_s27, %s574_s25 }
  0x3f   : > { %p571_p13 = pnand %p569_p12, %p555_p3  ;;  %p577_p10 = scmp.lt.s32.totalorder %s575_s28, %s568_s21 }
  0x41   : > { %p572_p0 = pneg %p571_p13  ;;  %p578_p1 = por %p577_p10, %p576_p5 }
  0x43   : > { %p579_p2 = pnand %p578_p1, %p572_p0 }
  0x45   : > { %582 = shalt.err (!%p579_p2)
}
  0x46   : > { %468 = dma.hbm_to_vmem [thread:$0]  (!%p790_p11), %s788_s22, 128, %s794_s27, %s147_s4  }
  0x47   : > { %p921_p7 = scmp.ne.s32.totalorder %s912_s20, 0 }
  0x48   : > { %p922_p3 = scmp.eq.s32.totalorder (!%p921_p7), %s704_s16, 0 }
  0x49   : > { %167 = sbr.rel (%p921_p7) target bundleno = 376 (0x178), region = 32 }
  0x50   : > { %628 = dma.done.wait (%p922_p3), [#allocation3], 32   ;;  %p923_p4 = pmov %p922_p3 }
  0x51   : > { %s828_s29 = sand.u32 1, %s645_s13   ;;  %p924_p11 = scmp.ne.s32.totalorder %s910_s18, 0 }
  0x52   : > { %630 = vsyncadd (%p923_p4), [#allocation3], 4294967264  ;;  %s442_s26 = sshll.u32 %s828_s29, 3  ;;  %s174_s30 = scalar_lea.sflag [#allocation6], %s828_s29 }
  0x53   : > { %s177_s22 = scalar_lea.vmem [#allocation5], %s442_s26 }
  0x54   : > { %632 = dma.done.wait (%p924_p11), %s174_s30, 128  }
  0x55   : > { %634 = vsyncadd (%p924_p11), %s174_s30, 4294967168  ;;  %v838_v0 = vld [vmem:[%s177_s22] sm:$0xff]  ;;  %v657_v1 = vmov 0.0   ;;  %s658_s20 = smov 1   ;;  %s659_s27 = smov 127   ;;  %v202_v5 = vlaneseq }
  0x56   : > { %vm219_vm0 = vcmp.ge.f32.partialorder %v838_v0, 0.11764706  ;;  %v201_v9 = vld [vmem:[#allocation2] sm:$0x3]  ;;  %s660_s18 = smov 112   ;;  %s661_s4 = smov 16  }
  0x57   : > { %v444_v2 = vsel %vm219_vm0, 1.0, %v657_v1  ;;  %v203_v6 = vshrl.u32 %v202_v5, 7  ;;  %v842_v10 = vand.u32 127, %v202_v5  ;;  %v210_v40 = vld [vmem:[%s904_s1] sm:$0x3]  ;;  %s452_s7 = sshll.u32 %s704_s16, 7 }
  0x58   : > { %v223_v3 = vcombine.high %v444_v2, %v444_v2  ;;  %s199_s8 = scalar_lea.vmem [#allocation7], %s442_s26  ;;  %s859_s24 = scalar_lea.hbm %s906_s3, %s452_s7 }
  0x59   : > { %v204_v7 = vsub.s32 0, %v203_v6  ;;  %v208_v8 = vsub.s32 1, %v203_v6  ;;  %vm231_vm1 = vcmp.lt.s32.totalorder %v842_v10, 1  ;;  %vm238_vm4 = vcmp.lt.s32.totalorder %v842_v10, 127  ;;  %s351_s9 = sshll.u32 %s199_s8, 4  ;;  %s337_s25 = scalar_lea.sflag [#allocation4], %s828_s29  ;;  %s861_s9 = int_to_ptr.vmem [resolvable:$true] %s351_s9 }
  0x5a   : > { %v515_v4 = vpack.i.bf16 %v223_v3, %v444_v2  ;;  %vm284_vm11 = vcmp.lt.s32.totalorder %v842_v10, 16  ;;  %vm291_vm14 = vcmp.lt.s32.totalorder %v842_v10, 112  ;;  %s583_s28 = scalar_lea.vmem %s861_s9, 128  ;;  %s662_s16 = smov [#allocation7]  }
  0x5b   : > { %v205_v11 = vrot.slane %v201_v9, %v204_v7  ;;  %v209_v12 = vrot.slane %v201_v9, %v208_v8  ;;  %v214_v41 = vrot.slane %v210_v40, %v204_v7  ;;  %v218_v42 = vrot.slane %v210_v40, %v208_v8  ;;  %p584_p6 = scmp.ne.s32.totalorder %s861_s9, %s583_s28  ;;  %s587_s26 = sshll.u32 %s662_s16, 4  ;;  %s588_s26 = int_to_ptr.vmem [resolvable:$false] %s587_s26 }
  0x5c   : > { %516 = vrot.lane.b32.xlu0 %v515_v4, %s658_s20  ;;  %s589_s30 = scalar_lea.vmem %s588_s26, 256  ;;  %p590_p13 = scmp.lt.s32.totalorder %s861_s9, %s588_s26 }
  0x5d   : > { %vm241_vm2 = vcmp.ge.s32.totalorder %v205_v11, 1  ;;  %vm242_vm3 = vcmp.ge.s32.totalorder %v209_v12, 1  ;;  %vm250_vm5 = vcmp.le.s32.totalorder %v205_v11, 14  ;;  %vm251_vm6 = vcmp.le.s32.totalorder %v209_v12, 14  ;;  %p585_p9 = pnand %p584_p6, %p775_p8  ;;  %p591_p0 = scmp.lt.s32.totalorder %s589_s30, %s583_s28 }
  0x5e   : > { %vm259_vm7 = vcmp.eq.s32.totalorder %v205_v11, 0  ;;  %vm260_vm8 = vcmp.eq.s32.totalorder %v209_v12, 0  ;;  %vm268_vm9 = vcmp.eq.s32.totalorder %v205_v11, 15  ;;  %vm269_vm10 = vcmp.eq.s32.totalorder %v209_v12, 15 }
  0x5f   : > { %vm294_vm12 = vcmp.ge.s32.totalorder %v214_v41, 1  ;;  %vm295_vm13 = vcmp.ge.s32.totalorder %v218_v42, 1  ;;  %vm303_vm15 = vcmp.le.s32.totalorder %v214_v41, 14  ;;  %vm304_vm0 = vcmp.le.s32.totalorder %v218_v42, 14  ;;  %p586_p12 = pneg %p585_p9  ;;  %p592_p5 = por %p591_p0, %p590_p13 }
  0x60   : > { %521 = vrot.lane.b32.xlu0 %v515_v4, %s659_s27 }
  0x61   : > { %p593_p10 = pnand %p592_p5, %p586_p12 }
  0xce   : > { %v517_v13 = vpop.permute.xlu0 %516 }
  0xcf   : > { %v519_v14 = vunpack.i.h.bf16 %v517_v13  ;;  %v518_v15 = vunpack.i.l.bf16 %v517_v13 }
  0xd1   : > { %v232_v16 = vsel %vm231_vm1, %v518_v15, %v519_v14  ;;  %v233_v17 = vsel %vm231_vm1, %v519_v14, %v518_v15  ;;  %vm312_vm1 = vcmp.eq.s32.totalorder %v214_v41, 0 }
  0xd2   : > { %v243_v18 = vsel %vm241_vm2, %v233_v17, 0.0  ;;  %v244_v19 = vsel %vm242_vm3, %v232_v16, 0.0  ;;  %v522_v20 = vpop.permute.xlu0 %521  ;;  %v270_v32 = vsel %vm268_vm9, %v233_v17, 0.0  ;;  %v271_v33 = vsel %vm269_vm10, %v232_v16, 0.0 }
  0xd3   : > { %v247_v21 = vcombine.low %v243_v18, %v244_v19  ;;  %v524_v22 = vunpack.i.h.bf16 %v522_v20  ;;  %v523_v23 = vunpack.i.l.bf16 %v522_v20  ;;  %v274_v36 = vcombine.low %v270_v32, %v271_v33 }
  0xd4   : > { %vm313_vm2 = vcmp.eq.s32.totalorder %v218_v42, 0  ;;  %vm321_vm3 = vcmp.eq.s32.totalorder %v214_v41, 15 }
  0xd5   : > { %v239_v24 = vsel %vm238_vm4, %v523_v23, %v524_v22  ;;  %v240_v25 = vsel %vm238_vm4, %v524_v22, %v523_v23  ;;  %v249_v30 = vadd.f32 %v444_v2, %v247_v21  ;;  %vm322_vm4 = vcmp.eq.s32.totalorder %v218_v42, 15 }
  0xd6   : > { %v252_v26 = vsel %vm250_vm5, %v239_v24, 0.0  ;;  %v253_v27 = vsel %vm251_vm6, %v240_v25, 0.0  ;;  %v261_v28 = vsel %vm259_vm7, %v239_v24, 0.0  ;;  %v262_v29 = vsel %vm260_vm8, %v240_v25, 0.0 }
  0xd7   : > { %v256_v31 = vcombine.low %v252_v26, %v253_v27  ;;  %v265_v35 = vcombine.low %v261_v28, %v262_v29 }
  0xd9   : > { %v258_v34 = vadd.f32 %v256_v31, %v249_v30 }
  0xdb   : > { %v267_v37 = vadd.f32 %v265_v35, %v258_v34 }
  0xdd   : > { %v276_v38 = vadd.f32 %v274_v36, %v267_v37 }
  0xdf   : > { %287 = vrot.lane.b32.xlu0 %v276_v38, %s660_s18  ;;  %280 = vrot.lane.b32.xlu1 %v276_v38, %s661_s4  ;;  %v278_v39 = vcombine.high %v276_v38, %v276_v38 }
  0xe3   : > { %282 = vrot.lane.b32.xlu1 %v278_v39, %s661_s4 }
  0xe7   : > { %289 = vrot.lane.b32.xlu1 %v278_v39, %s660_s18 }
 0x151   : > { %v281_v43 = vpop.permute.xlu1 %280  ;;  %v288_v50 = vpop.permute.xlu0 %287 }
 0x155   : > { %v283_v44 = vpop.permute.xlu1 %282 }
 0x156   : > { %v285_v45 = vsel %vm284_vm11, %v281_v43, %v283_v44  ;;  %v286_v46 = vsel %vm284_vm11, %v283_v44, %v281_v43 }
 0x157   : > { %v296_v47 = vsel %vm294_vm12, %v286_v46, 0.0  ;;  %v297_v48 = vsel %vm295_vm13, %v285_v45, 0.0  ;;  %v323_v60 = vsel %vm321_vm3, %v286_v46, 0.0  ;;  %v324_v61 = vsel %vm322_vm4, %v285_v45, 0.0 }
 0x158   : > { %v300_v49 = vcombine.low %v296_v47, %v297_v48  ;;  %v327_v2 = vcombine.low %v323_v60, %v324_v61 }
 0x159   : > { %v290_v51 = vpop.permute.xlu1 %289 }
 0x15a   : > { %v292_v52 = vsel %vm291_vm14, %v288_v50, %v290_v51  ;;  %v293_v53 = vsel %vm291_vm14, %v290_v51, %v288_v50  ;;  %v302_v58 = vadd.f32 %v300_v49, %v276_v38 }
 0x15b   : > { %v305_v54 = vsel %vm303_vm15, %v292_v52, 0.0  ;;  %v306_v55 = vsel %vm304_vm0, %v293_v53, 0.0  ;;  %v314_v56 = vsel %vm312_vm1, %v292_v52, 0.0  ;;  %v315_v57 = vsel %vm313_vm2, %v293_v53, 0.0 }
 0x15c   : > { %v309_v59 = vcombine.low %v305_v54, %v306_v55  ;;  %v318_v63 = vcombine.low %v314_v56, %v315_v57 }
 0x15e   : > { %v311_v62 = vadd.f32 %v309_v59, %v302_v58 }
 0x160   : > { %v320_v3 = vadd.f32 %v318_v63, %v311_v62 }
 0x162   : > { %v329_v4 = vadd.f32 %v327_v2, %v320_v3 }
 0x164   : > { %vm330_vm5 = vcmp.ge.f32.partialorder %v329_v4, 5.4 }
 0x165   : > { %v445_v5 = vsel %vm330_vm5, 1.0, %v657_v1 }
 0x166   : > { %v333_v6 = vsub.f32 1.0, %v445_v5 }
 0x168   : > { %v334_v7 = vmul.f32 %v333_v6, %v838_v0 }
 0x16a   : > { %335 = vst [vmem:[%s199_s8] sm:$0xff] %v334_v7 }
 0x16b   : > { %596 = shalt.err (!%p593_p10)
}
 0x16c   : > { %s597_s29 = scalar_lea.hbm %s859_s24, 128  ;;  %s601_s27 = scalar_lea.hbm %s906_s3, 256 }
 0x16d   : > { %p598_p1 = scmp.ne.s32.totalorder %s859_s24, %s597_s29  ;;  %p602_p3 = scmp.lt.u32.totalorder %s859_s24, %s906_s3 }
 0x16e   : > { %p603_p4 = scmp.lt.u32.totalorder %s601_s27, %s597_s29  ;;  %p605_p6 = scmp.lt.u32.totalorder %s597_s29, %s859_s24 }
 0x16f   : > { %p599_p2 = pnand %p598_p1, %p775_p8 }
 0x170   : > { %p604_p11 = por %p603_p4, %p602_p3 }
 0x171   : > { %p600_p7 = pneg %p599_p2 }
 0x172   : > { %p606_p9 = por %p605_p6, %p604_p11 }
 0x174   : > { %p607_p12 = pnand %p606_p9, %p600_p7 }
 0x176   : > { %610 = shalt.err (!%p607_p12)
}
 0x177   : > { %459 = dma.vmem_to_hbm [thread:$0]  (%p775_p8), %s861_s9, 128, %s859_s24, %s337_s25  }
 0x178 PF: > { %s363_s5 = sand.u32 1, %s641_s12   ;;  %p925_p13 = scmp.ne.s32.totalorder %s911_s19, 0 }
 0x179   : > { %p926_p0 = scmp.ge.s32.totalorder %s653_s15, 2  ;;  %s364_s6 = scalar_lea.sflag [#allocation4], %s363_s5 }
 0x17b   : > { %p470_p5 = pnand %p926_p0, %p925_p13 }
 0x17d   : > { %636 = dma.done.wait (!%p470_p5), %s364_s6, 128  }
 0x17e   : > { %638 = vsyncadd (!%p470_p5), %s364_s6, 4294967168  ;;  %p17_p10 = scmp.ge.s32.totalorder %s731_s23, 4   ;;  %s927_s12 = smov %s645_s13 }
 0x17f   : > { %s928_s13 = smov %s649_s14  ;;  %s929_s14 = smov %s767_s11 }
 0x180   : > { %s930_s15 = smov %s731_s23  ;;  %19 = sbr.rel (!%p17_p10) target bundleno = 6 (0x6), region = 82 }
 0x187   :  { %369 = vsyncpa [#allocation3], 1 }
 0x188   :  { %371 = vsyncpa [#allocation3 + $0x1], 1 }
 0x189   :  { %372 = vsyncpa [#allocation6], 1 }
 0x18a   :  { %374 = vsyncpa [#allocation6 + $0x1], 1 }
 0x18b   :  { %375 = vsyncpa [#allocation4], 1 }
 0x18c   :  { %377 = vsyncpa [#allocation4 + $0x1], 1 }

</bundles_post_ra>
